<compile_context>
chip_gen: v7x
topology: tpu7x:2x2x1
jax: 0.10.0
libtpu: 0.0.40
codegen_flags: <defaults>
</compile_context>

<pallas_src>
import math
import functools

import jax
import jax.numpy as jnp
from jax.experimental import pallas as pl
from jax.experimental.pallas import tpu as pltpu

_GELU_C = math.sqrt(2.0 / math.pi)
_MiB = 1024 * 1024
_VMEM_BUDGET = 40 * _MiB      # plan tiles so the VMEM estimate stays under this
_VMEM_LIMIT_CAP = 56 * _MiB   # never request more scoped VMEM (v7x: 64 MiB physical)


def _gelu_f32(h):
    # BERT tanh-approx GELU in f32 (tanh -> EUP slot; reuse h*h to trim VPU work).
    h2 = h * h
    return 0.5 * h * (1.0 + jnp.tanh(_GELU_C * (h + 0.044715 * h2 * h)))


# ----------------------------- kernels ------------------------------------ #

def _ffn_resident_kernel(x_ref, w1_ref, b1_ref, w2_ref, b2_ref, o_ref, *, tile_h):
    """Weights VMEM-resident (constant index_map); grid is row tiles only."""
    x = x_ref[...]
    H = w1_ref.shape[1]
    acc = jnp.broadcast_to(b2_ref[...].astype(jnp.float32), o_ref.shape)
    # Static chunk loop over the hidden dim keeps (tm, th) intermediates small.
    for h0 in range(0, H, tile_h):
        h1 = min(h0 + tile_h, H)
        h = jnp.dot(x, w1_ref[:, h0:h1], preferred_element_type=jnp.float32)
        h = h + b1_ref[:, h0:h1].astype(jnp.float32)
        g = _gelu_f32(h)
        acc = acc + jnp.dot(g.astype(w2_ref.dtype), w2_ref[h0:h1, :],
                            preferred_element_type=jnp.float32)
    o_ref[...] = acc.astype(o_ref.dtype)


def _ffn_tiled_kernel(x_ref, w1_ref, b1_ref, w2_ref, b2_ref, o_ref, *scratch):
    """H-streamed plan.  scratch == (acc_ref,) for non-f32 outputs; otherwise we
    accumulate directly into the output block (resident across the h axis).
    NOTE: correctness relies on the hidden axis being the innermost grid axis.
    """
    acc_ref = scratch[0] if scratch else o_ref
    h_idx = pl.program_id(1)

    @pl.when(h_idx == 0)
    def _init():
        acc_ref[...] = jnp.broadcast_to(
            b2_ref[...].astype(jnp.float32), acc_ref.shape).astype(acc_ref.dtype)

    h = jnp.dot(x_ref[...], w1_ref[...], preferred_element_type=jnp.float32)
    h = h + b1_ref[...].astype(jnp.float32)
    g = _gelu_f32(h)
    acc_ref[...] += jnp.dot(g.astype(w2_ref.dtype), w2_ref[...],
                            preferred_element_type=jnp.float32).astype(acc_ref.dtype)

    if scratch:  # trace-time: only needed when a separate f32 scratch is used
        @pl.when(h_idx == pl.num_programs(1) - 1)
        def _finalize():
            o_ref[...] = acc_ref[...].astype(o_ref.dtype)


# ----------------------------- planning ----------------------------------- #

def _round_up(x, m):
    return (x + m - 1) // m * m


def _sublane(dtype):
    return {4: 8, 2: 16, 1: 32}.get(jnp.dtype(dtype).itemsize, 8)


def _plan_hidden(H, target):
    """Largest lane-aligned chunk (preferring 256-aligned for v6e/v7x MXU)
    that divides H exactly."""
    for step in (256, 128):
        c = (min(target, H) // step) * step
        while c >= step:
            if H % c == 0:
                return c
            c -= step
    return H   # H not a multiple of 128 (toy shapes only): untiled hidden axis


def _plan_rows(M, target, sub):
    """Row tile (multiple of `sub`) and the padded row count it divides."""
    target = max(_round_up(target, sub), sub)
    if M > target:
        # Prefer a tile that divides M exactly (avoids a pad + slice HBM round
        # trip in the wrapper), but don't shrink below target/2 for it.
        c = target
        while c >= max(target // 2, sub):
            if M % c == 0:
                return c, M
            c -= sub
        return target, _round_up(M, target)
    tm = _round_up(M, sub)
    # Guarantee >=2 row tiles when each half keeps >=128 rows, so the
    # "parallel" axis can shard across v7x's two TensorCores.
    half = tm // 2
    if half >= 128 and half % sub == 0:
        return half, tm
    return tm, tm


def _vmem_bytes_resident(tm, th, D, H, w_isz, x_isz, o_isz):
    weights = 2 * (D * H + H * D + H + D) * w_isz        # pipeline double-buffers
    stream = 2 * tm * D * x_isz + 2 * tm * D * o_isz     # x / out row tiles
    inner = 3 * tm * min(th, H) * 4 + tm * D * 4         # h/g temporaries + f32 acc
    return weights + stream + inner


def _vmem_bytes_tiled(tm, th, D, w_isz, x_isz, o_isz, use_scratch):
    stream = 2 * (tm * D * x_isz + (D * th + th + th * D + D) * w_isz)
    outb = 2 * tm * D * o_isz
    acc = tm * D * 4 if use_scratch else 0
    inner = 3 * tm * th * 4
    return stream + outb + acc + inner


# ----------------------------- wrapper ------------------------------------ #

@functools.partial(jax.jit, static_argnames=("tile_m", "tile_h", "force_tiled"))
def feedforward_pallas(x, w1, b1, w2, b2, *, tile_m=1024, tile_h=512,
                       force_tiled=False):
    """x: (B, L, D). w1: (D, 4D), b1: (4D,), w2: (4D, D), b2: (D,)."""
    B, L, D = x.shape
    H = w1.shape[1]
    M = B * L

    x_isz = jnp.dtype(x.dtype).itemsize
    w_isz = jnp.dtype(w1.dtype).itemsize
    o_isz = x_isz
    sub = _sublane(x.dtype)
    th = _plan_hidden(H, tile_h)
    out_dtype = x.dtype
    use_scratch = jnp.dtype(out_dtype) != jnp.dtype(jnp.float32)

    def _fit(target, est):
        t = max(_round_up(target, sub), sub)
        while t > max(sub, 128) and est(t) > _VMEM_BUDGET:
            t = max(_round_up(t // 2, sub), sub)
        return t

    # Prefer the resident-weight plan whenever the full weights (double-buffered
    # by the pipeline) plus row tiles fit the VMEM budget.
    tm_res = _fit(tile_m,
                  lambda t: _vmem_bytes_resident(t, th, D, H, w_isz, x_isz, o_isz))
    resident = (not force_tiled) and (
        _vmem_bytes_resident(tm_res, th, D, H, w_isz, x_isz, o_isz) <= _VMEM_BUDGET)

    if resident:
        tm, M_pad = _plan_rows(M, tm_res, sub)
        est = _vmem_bytes_resident(tm, th, D, H, w_isz, x_isz, o_isz)
    else:
        tm_t = _fit(tile_m,
                    lambda t: _vmem_bytes_tiled(t, th, D, w_isz, x_isz, o_isz,
                                                use_scratch))
        tm, M_pad = _plan_rows(M, tm_t, sub)
        est = _vmem_bytes_tiled(tm, th, D, w_isz, x_isz, o_isz, use_scratch)

    # Explicit scoped-VMEM limit: v5e defaults to 16 MiB, v6e/v7x to 32 MiB;
    # cap at 56 MiB so v7x's 64 MiB physical VMEM is never exceeded.
    vmem_limit = int(min(max(est * 1.25 + 4 * _MiB, 32 * _MiB), _VMEM_LIMIT_CAP))

    x2 = x.reshape(M, D)
    if M_pad != M:
        x2 = jnp.pad(x2, ((0, M_pad - M), (0, 0)))
    b1_2 = b1.reshape(1, H)
    b2_2 = b2.reshape(1, D)

    cost = pl.CostEstimate(
        flops=4 * M * D * H,                         # two (M,D)x(D,H)-class matmuls
        transcendentals=M * H,                       # one tanh per hidden element
        bytes_accessed=int(2 * M * D * x_isz + (D * H + H * D + H + D) * w_isz))

    if resident:
        out2 = pl.pallas_call(
            functools.partial(_ffn_resident_kernel, tile_h=th),
            out_shape=jax.ShapeDtypeStruct((M_pad, D), out_dtype),
            grid_spec=pltpu.PrefetchScalarGridSpec(
                num_scalar_prefetch=0,
                grid=(M_pad // tm,),
                in_specs=[
                    pl.BlockSpec((tm, D), lambda i: (i, 0)),   # x row tile (streams)
                    pl.BlockSpec((D, H), lambda i: (0, 0)),    # w1 (VMEM resident)
                    pl.BlockSpec((1, H), lambda i: (0, 0)),    # b1 (resident)
                    pl.BlockSpec((H, D), lambda i: (0, 0)),    # w2 (VMEM resident)
                    pl.BlockSpec((1, D), lambda i: (0, 0)),    # b2 (resident)
                ],
                out_specs=pl.BlockSpec((tm, D), lambda i: (i, 0)),
            ),
            compiler_params=pltpu.CompilerParams(
                dimension_semantics=("parallel",),
                vmem_limit_bytes=vmem_limit),
            cost_estimate=cost,
        )(x2, w1, b1_2, w2, b2_2)
    else:
        scratch = [pltpu.VMEM((tm, D), jnp.float32)] if use_scratch else []
        out2 = pl.pallas_call(
            _ffn_tiled_kernel,
            out_shape=jax.ShapeDtypeStruct((M_pad, D), out_dtype),
            grid_spec=pltpu.PrefetchScalarGridSpec(
                num_scalar_prefetch=0,
                grid=(M_pad // tm, H // th),       # hidden axis MUST stay innermost
                in_specs=[
                    pl.BlockSpec((tm, D), lambda i, h: (i, 0)),   # x (resident over H)
                    pl.BlockSpec((D, th), lambda i, h: (0, h)),   # w1 H-chunk
                    pl.BlockSpec((1, th), lambda i, h: (0, h)),   # b1 H-chunk
                    pl.BlockSpec((th, D), lambda i, h: (h, 0)),   # w2 H-chunk
                    pl.BlockSpec((1, D), lambda i, h: (0, 0)),    # b2
                ],
                out_specs=pl.BlockSpec((tm, D), lambda i, h: (i, 0)),
                scratch_shapes=scratch,
            ),
            compiler_params=pltpu.CompilerParams(
                dimension_semantics=("parallel", "arbitrary"),
                vmem_limit_bytes=vmem_limit),
            cost_estimate=cost,
        )(x2, w1, b1_2, w2, b2_2)

    if M_pad != M:
        out2 = out2[:M]
    return out2.reshape(B, L, D)


# ----------------------------- reference / test ---------------------------- #

def _reference(x, w1, b1, w2, b2):
    h = jnp.einsum("bld,dh->blh", x.astype(jnp.float32), w1.astype(jnp.float32))
    h = h + b1.astype(jnp.float32)
    g = 0.5 * h * (1.0 + jnp.tanh(_GELU_C * (h + 0.044715 * h ** 3)))
    return jnp.einsum("blh,hd->bld", g, w2.astype(jnp.float32)) + b2.astype(jnp.float32)


if __name__ == "__main__":
    # Small, module-consistent shapes: batch=2, seq=8, dim=32 (hidden = 4*dim = 128)
    batch, seq, dim = 2, 8, 32
    hidden = 4 * dim

    key = jax.random.PRNGKey(0)
    kx, k1, k2, k3, k4 = jax.random.split(key, 5)

    x = jax.random.normal(kx, (batch, seq, dim), dtype=jnp.float32)
    # nn.Linear(dim, 4*dim): PyTorch weight is (4*dim, dim); we store its transpose.
    w1 = jax.random.normal(k1, (dim, hidden), dtype=jnp.float32) * (1.0 / math.sqrt(dim))
    b1 = jax.random.normal(k2, (hidden,), dtype=jnp.float32) * 0.02
    # nn.Linear(4*dim, dim): weight (dim, 4*dim); stored transposed as (4*dim, dim).
    w2 = jax.random.normal(k3, (hidden, dim), dtype=jnp.float32) * (1.0 / math.sqrt(hidden))
    b2 = jax.random.normal(k4, (dim,), dtype=jnp.float32) * 0.02

    ref = _reference(x, w1, b1, w2, b2)

    # f32, resident-weight plan (default for these sizes).
    out = jax.block_until_ready(feedforward_pallas(x, w1, b1, w2, b2))
    assert out.shape == (batch, seq, dim)
    assert jnp.allclose(out, ref, atol=1e-5, rtol=1e-5), "f32 resident mismatch"

    # f32, H-streamed plan (exercised explicitly; accumulates directly in o_ref).
    out_t = jax.block_until_ready(
        feedforward_pallas(x, w1, b1, w2, b2, force_tiled=True))
    assert jnp.allclose(out_t, ref, atol=1e-5, rtol=1e-5), "f32 tiled mismatch"

    # bf16 paths (halved weight traffic / 2x MXU on v6e+; loose tolerance).
    xb, w1b, b1b, w2b, b2b = (a.astype(jnp.bfloat16) for a in (x, w1, b1, w2, b2))
    out_bf = jax.block_until_ready(feedforward_pallas(xb, w1b, b1b, w2b, b2b))
    assert jnp.allclose(out_bf.astype(jnp.float32), ref, atol=1e-1, rtol=1e-1), \
        "bf16 resident mismatch"

    out_bf_t = jax.block_until_ready(
        feedforward_pallas(xb, w1b, b1b, w2b, b2b, force_tiled=True))
    assert jnp.allclose(out_bf_t.astype(jnp.float32), ref, atol=1e-1, rtol=1e-1), \
        "bf16 tiled mismatch"

    print("KERNEL_OK")
</pallas_src>

<mosaic_0001>
module attributes {stable_mosaic.version = 11 : i64} {
  func.func @_ffn_resident_kernel(%arg0: i32, %arg1: memref<16x32xf32, #tpu.memory_space<vmem>>, %arg2: memref<32x128xf32, #tpu.memory_space<vmem>>, %arg3: memref<1x128xf32, #tpu.memory_space<vmem>>, %arg4: memref<128x32xf32, #tpu.memory_space<vmem>>, %arg5: memref<1x32xf32, #tpu.memory_space<vmem>>, %arg6: memref<16x32xf32, #tpu.memory_space<vmem>>) attributes {dimension_semantics = [#tpu.dimension_semantics<parallel>], iteration_bounds = array<i64: 1>, scalar_prefetch = 0 : i64, scratch_operands = 0 : i64, tpu.core_type = #tpu.core_type<tc>, window_params = [{transform_indices = @transform_0, window_bounds = array<i64: 16, 32>}, {pipeline_mode = #tpu.pipeline_mode<synchronous>, transform_indices = @transform_1, window_bounds = array<i64: 32, 128>}, {pipeline_mode = #tpu.pipeline_mode<synchronous>, transform_indices = @transform_2, window_bounds = array<i64: 1, 128>}, {pipeline_mode = #tpu.pipeline_mode<synchronous>, transform_indices = @transform_3, window_bounds = array<i64: 128, 32>}, {pipeline_mode = #tpu.pipeline_mode<synchronous>, transform_indices = @transform_4, window_bounds = array<i64: 1, 32>}, {transform_indices = @transform_5, window_bounds = array<i64: 16, 32>}]} {
    %c0 = arith.constant 0 : index
    %c0_0 = arith.constant 0 : index
    %0 = vector.load %arg1[%c0, %c0_0] : memref<16x32xf32, #tpu.memory_space<vmem>>, vector<16x32xf32>
    %c0_1 = arith.constant 0 : index
    %c0_2 = arith.constant 0 : index
    %1 = vector.load %arg5[%c0_1, %c0_2] : memref<1x32xf32, #tpu.memory_space<vmem>>, vector<1x32xf32>
    %2 = vector.shape_cast %1 : vector<1x32xf32> to vector<1x32xf32>
    %3 = vector.broadcast %2 : vector<1x32xf32> to vector<16x32xf32>
    %c0_3 = arith.constant 0 : index
    %c0_4 = arith.constant 0 : index
    %4 = vector.load %arg2[%c0_3, %c0_4] : memref<32x128xf32, #tpu.memory_space<vmem>>, vector<32x128xf32>
    %cst = arith.constant dense<0.000000e+00> : vector<16x128xf32>
    %5 = tpu.matmul %0, %4, %cst {dimension_numbers = #tpu.dot_dimension_numbers<[1], [0], [0], [1], [0, 0, 1, 1], [], []>} : vector<16x32xf32>, vector<32x128xf32>, vector<16x128xf32> -> vector<16x128xf32>
    %c0_5 = arith.constant 0 : index
    %c0_6 = arith.constant 0 : index
    %6 = vector.load %arg3[%c0_5, %c0_6] : memref<1x128xf32, #tpu.memory_space<vmem>>, vector<1x128xf32>
    %7 = vector.broadcast %6 : vector<1x128xf32> to vector<16x128xf32>
    %8 = arith.addf %5, %7 : vector<16x128xf32>
    %9 = arith.mulf %8, %8 : vector<16x128xf32>
    %cst_7 = arith.constant 5.000000e-01 : f32
    %10 = vector.broadcast %cst_7 : f32 to vector<16x128xf32>
    %11 = arith.mulf %10, %8 : vector<16x128xf32>
    %cst_8 = arith.constant 4.471500e-02 : f32
    %12 = vector.broadcast %cst_8 : f32 to vector<16x128xf32>
    %13 = arith.mulf %12, %9 : vector<16x128xf32>
    %14 = arith.mulf %13, %8 : vector<16x128xf32>
    %15 = arith.addf %8, %14 : vector<16x128xf32>
    %cst_9 = arith.constant 0.797884583 : f32
    %16 = vector.broadcast %cst_9 : f32 to vector<16x128xf32>
    %17 = arith.mulf %16, %15 : vector<16x128xf32>
    %18 = math.tanh %17 : vector<16x128xf32>
    %cst_10 = arith.constant 1.000000e+00 : f32
    %19 = vector.broadcast %cst_10 : f32 to vector<16x128xf32>
    %20 = arith.addf %19, %18 : vector<16x128xf32>
    %21 = arith.mulf %11, %20 : vector<16x128xf32>
    %c0_11 = arith.constant 0 : index
    %c0_12 = arith.constant 0 : index
    %22 = vector.load %arg4[%c0_11, %c0_12] : memref<128x32xf32, #tpu.memory_space<vmem>>, vector<128x32xf32>
    %cst_13 = arith.constant dense<0.000000e+00> : vector<16x32xf32>
    %23 = tpu.matmul %21, %22, %cst_13 {dimension_numbers = #tpu.dot_dimension_numbers<[1], [0], [0], [1], [0, 0, 1, 1], [], []>} : vector<16x128xf32>, vector<128x32xf32>, vector<16x32xf32> -> vector<16x32xf32>
    %24 = arith.addf %3, %23 : vector<16x32xf32>
    %c0_14 = arith.constant 0 : index
    %c0_15 = arith.constant 0 : index
    %25 = vector.load %arg6[%c0_14, %c0_15] : memref<16x32xf32, #tpu.memory_space<vmem>>, vector<16x32xf32>
    tpu.vector_store %arg6[%c0_14, %c0_15], %24 {strides = array<i32>} : memref<16x32xf32, #tpu.memory_space<vmem>>, vector<16x32xf32>,
    return
  }
  func.func @transform_0(%arg0: i32) -> (i32, i32) {
    %c0_i32 = arith.constant 0 : i32
    %c0_i32_0 = arith.constant 0 : i32
    return %arg0, %c0_i32 : i32, i32
  }
  func.func @transform_1(%arg0: i32) -> (i32, i32) {
    %c0_i32 = arith.constant 0 : i32
    %c0_i32_0 = arith.constant 0 : i32
    %c0_i32_1 = arith.constant 0 : i32
    return %c0_i32, %c0_i32_0 : i32, i32
  }
  func.func @transform_2(%arg0: i32) -> (i32, i32) {
    %c0_i32 = arith.constant 0 : i32
    %c0_i32_0 = arith.constant 0 : i32
    %c0_i32_1 = arith.constant 0 : i32
    return %c0_i32, %c0_i32_0 : i32, i32
  }
  func.func @transform_3(%arg0: i32) -> (i32, i32) {
    %c0_i32 = arith.constant 0 : i32
    %c0_i32_0 = arith.constant 0 : i32
    %c0_i32_1 = arith.constant 0 : i32
    return %c0_i32, %c0_i32_0 : i32, i32
  }
  func.func @transform_4(%arg0: i32) -> (i32, i32) {
    %c0_i32 = arith.constant 0 : i32
    %c0_i32_0 = arith.constant 0 : i32
    %c0_i32_1 = arith.constant 0 : i32
    return %c0_i32, %c0_i32_0 : i32, i32
  }
  func.func @transform_5(%arg0: i32) -> (i32, i32) {
    %c0_i32 = arith.constant 0 : i32
    %c0_i32_0 = arith.constant 0 : i32
    return %arg0, %c0_i32 : i32, i32
  }
}

</mosaic_0001>

<bundles_post_ra>
// kernel: feedforward_pallas.1
= control target key start
LH: loop header
LB: loop body
LE: loop exit
PB: predicated region body
PF: predicated region fallthrough
CT: control target
= control target key end

     0   :  { %vm41_vm0 = vcmask 261120   ;;  %s518_s0 = inlined_call_operand.vmem [shape: f32[16,32], index: 0, kind: input, shape index: {}]   ;;  %s519_s1 = inlined_call_operand.vmem [shape: f32[32,128], index: 1, kind: input, shape index: {}]   ;;  %s520_s2 = inlined_call_operand.vmem [shape: f32[1,128], index: 2, kind: input, shape index: {}]   ;;  %s521_s3 = inlined_call_operand.vmem [shape: f32[128,32], index: 3, kind: input, shape index: {}]   ;;  %s522_s4 = inlined_call_operand.vmem [shape: f32[1,32], index: 4, kind: input, shape index: {}]   ;;  %s523_s5 = inlined_call_operand.hbm [shape: f32[16,32], index: 5, kind: output, shape index: {}]  }
   0x1   :  { %v30_v0 = vld [vmem:[%s519_s1] sm:$0xff]  ;;  %v31_v1 = vld [vmem:[%s519_s1 + $0x8] sm:$0xff]  ;;  %v32_v2 = vld [vmem:[%s519_s1 + $0x10] sm:$0xff] }
   0x2   :  { %v326_v3 = vpack.c.bf16 %v31_v1, %v30_v0  ;;  %v33_v4 = vld [vmem:[%s519_s1 + $0x18] sm:$0xff]  ;;  %v21_v5 = vld [vmem:[%s518_s0] sm:$0xff]  ;;  %v142_v8 = vld [vmem:[%s521_s3 + $0x8] sm:$0xff] }
   0x3   :  { %v330_v6 = vpack.c.bf16 %v33_v4, %v32_v2  ;;  %288 = vmatprep.mubr.msk.f32.mxu0 %vm41_vm0, %v21_v5  ;;  %v141_v7 = vld [vmem:[%s521_s3] sm:$0xff] }
   0x4   :  { %10 = vsyncpa [#allocation3], 0  ;;  %327 = vmatprep.subr.bf16.mxu0 %v326_v3  ;;  %v334_v9 = vpack.c.bf16 %v142_v8, %v141_v7  ;;  %v22_v10 = vld [vmem:[%s518_s0 + $0x8] sm:$0xff]  ;;  %v143_v11 = vld [vmem:[%s521_s3 + $0x10] sm:$0xff]  ;;  %s397_s11 = smov [#allocation2]  }
   0x5   :  { %329 = vmatpush3.bf16.msra.mxu0 %v326_v3  ;;  %v144_v12 = vld [vmem:[%s521_s3 + $0x18] sm:$0xff]  ;;  %v145_v14 = vld [vmem:[%s521_s3 + $0x20] sm:$0xff]  ;;  %v146_v15 = vld [vmem:[%s521_s3 + $0x28] sm:$0xff]  ;;  %s241_s12 = sshll.u32 %s397_s11, 4  ;;  %s242_s12 = int_to_ptr.vmem [resolvable:$true] %s241_s12 }
   0x6   :  { %331 = vmatprep.subr.bf16.mxu0 %v330_v6  ;;  %335 = vmatprep.subr.bf16.mxu1 %v334_v9  ;;  %v338_v13 = vpack.c.bf16 %v144_v12, %v143_v11  ;;  %v342_v16 = vpack.c.bf16 %v146_v15, %v145_v14  ;;  %v147_v17 = vld [vmem:[%s521_s3 + $0x30] sm:$0xff]  ;;  %v148_v18 = vld [vmem:[%s521_s3 + $0x38] sm:$0xff]  ;;  %v149_v20 = vld [vmem:[%s521_s3 + $0x40] sm:$0xff]  ;;  %s373_s13 = scalar_lea.vmem %s242_s12, 256  ;;  %p378_p1 = scmp.lt.s32.totalorder %s242_s12, %s242_s12 }
   0x7   :  { %337 = vmatpush3.bf16.msra.mxu1 %v334_v9  ;;  %v346_v19 = vpack.c.bf16 %v148_v18, %v147_v17  ;;  %v150_v21 = vld [vmem:[%s521_s3 + $0x48] sm:$0xff]  ;;  %v151_v22 = vld [vmem:[%s521_s3 + $0x50] sm:$0xff]  ;;  %v152_v24 = vld [vmem:[%s521_s3 + $0x58] sm:$0xff]  ;;  %p374_p0 = scmp.ne.s32.totalorder %s242_s12, %s373_s13  ;;  %p379_p2 = scmp.lt.s32.totalorder %s373_s13, %s373_s13 }
   0x8   :  { %339 = vmatprep.subr.bf16.mxu1 %v338_v13  ;;  %v350_v23 = vpack.c.bf16 %v150_v21, %v149_v20  ;;  %v354_v25 = vpack.c.bf16 %v152_v24, %v151_v22  ;;  %v153_v26 = vld [vmem:[%s521_s3 + $0x60] sm:$0xff]  ;;  %v154_v27 = vld [vmem:[%s521_s3 + $0x68] sm:$0xff]  ;;  %v155_v29 = vld [vmem:[%s521_s3 + $0x70] sm:$0xff] }
   0x9   :  { %333 = vmatpush3.bf16.msra.mxu0 %v330_v6  ;;  %v358_v28 = vpack.c.bf16 %v154_v27, %v153_v26  ;;  %v156_v30 = vld [vmem:[%s521_s3 + $0x78] sm:$0xff]  ;;  %v253_v32 = vld [vmem:[%s520_s2] ss:$0 sm:$0xff]  ;;  %p380_p3 = por %p379_p2, %p378_p1 }
   0xa   :  { %v362_v31 = vpack.c.bf16 %v156_v30, %v155_v29  ;;  %v252_v55 = vld [vmem:[%s522_s4] ss:$0 sm:$0xff] }
   0xb   :  { %341 = vmatpush3.bf16.msra.mxu1 %v338_v13  ;;  %p381_p4 = pnand %p380_p3, %p374_p0 }
   0xc   :  { %289 = vmatmul.mubr.msk.f32.vlgmr.msra.gmra.mrb[0].mxu0 %vm41_vm0, %v22_v10  ;;  %343 = vmatprep.subr.bf16.mxu1 %v342_v16 }
   0xf   :  { %345 = vmatpush3.bf16.msra.mxu1 %v342_v16 }
  0x10   :  { %347 = vmatprep.subr.bf16.mxu1 %v346_v19 }
  0x13   :  { %349 = vmatpush3.bf16.msra.mxu1 %v346_v19 }
  0x14   :  { %351 = vmatprep.subr.bf16.mxu1 %v350_v23 }
  0x17   :  { %353 = vmatpush3.bf16.msra.mxu1 %v350_v23 }
  0x18   :  { %355 = vmatprep.subr.bf16.mxu1 %v354_v25 }
  0x1b   :  { %357 = vmatpush3.bf16.msra.mxu1 %v354_v25 }
  0x1c   :  { %359 = vmatprep.subr.bf16.mxu1 %v358_v28 }
  0x1f   :  { %361 = vmatpush3.bf16.msra.mxu1 %v358_v28 }
  0x20   :  { %363 = vmatprep.subr.bf16.mxu1 %v362_v31 }
  0x23   :  { %365 = vmatpush3.bf16.msra.mxu1 %v362_v31 }
  0xdf   :  { %v290_v33 = vpop.f32.mrb[0].mxu0 }
  0xe0   :  { %v120_v34 = vadd.f32 %v290_v33, %v253_v32  ;;  %v114_v35 = vpop.f32.mrb[1].mxu0 }
  0xe1   :  { %v115_v36 = vadd.f32 %v253_v32, %v114_v35 }
  0xe2   :  { %v124_v37 = vmul.f32 %v120_v34, %v120_v34  ;;  %v126_v52 = vmul.f32 0.5, %v120_v34 }
  0xe3   :  { %v123_v38 = vmul.f32 %v115_v36, %v115_v36  ;;  %v125_v50 = vmul.f32 0.5, %v115_v36 }
  0xe4   :  { %v128_v39 = vmul.f32 0.044715, %v124_v37 }
  0xe5   :  { %v127_v40 = vmul.f32 0.044715, %v123_v38 }
  0xe6   :  { %v130_v41 = vmul.f32 %v128_v39, %v120_v34 }
  0xe7   :  { %v129_v42 = vmul.f32 %v127_v40, %v115_v36 }
  0xe8   :  { %v132_v43 = vadd.f32 %v130_v41, %v120_v34 }
  0xe9   :  { %v131_v44 = vadd.f32 %v129_v42, %v115_v36 }
  0xea   :  { %v134_v45 = vmul.f32 0.7978846, %v132_v43 }
  0xeb   :  { %v133_v46 = vmul.f32 0.7978846, %v131_v44 }
  0xec   :  { %369 = vtanh.f32 %v134_v45 }
  0xed   :  { %371 = vtanh.f32 %v133_v46 }
  0xf6   :  { %v370_v47 = vpop.eup %369 }
  0xf7   :  { %v372_v48 = vpop.eup %371  ;;  %v138_v49 = vadd.f32 1.0, %v370_v47 }
  0xf8   :  { %v137_v51 = vadd.f32 1.0, %v372_v48 }
  0xf9   :  { %v140_v54 = vmul.f32 %v138_v49, %v126_v52 }
  0xfa   :  { %v139_v53 = vmul.f32 %v137_v51, %v125_v50 }
  0xfc   :  { %323 = vmatprep.mubr.f32.mxu1 %v139_v53 }
  0xfd   :  { %324 = vmatmul.mubr.f32.vlgmr.msra.gmra.mrb[0].mxu1 %v140_v54 }
 0x1d0   :  { %v325_v56 = vpop.f32.mrb[0].mxu1 }
 0x1d1   :  { %v233_v57 = vadd.f32 %v325_v56, %v252_v55  ;;  %v223_v58 = vpop.f32.mrb[1].mxu1 }
 0x1d2   :  { %v232_v59 = vadd.f32 %v252_v55, %v223_v58 }
 0x1d3   :  { %235 = vst.msk [vmem:[#allocation2 + $0x8] sm:$0xff] %vm41_vm0, %v233_v57 }
 0x1d4   :  { %234 = vst.msk [vmem:[#allocation2] sm:$0xff] %vm41_vm0, %v232_v59 }
 0x1d5   :  { %384 = shalt.err (!%p381_p4)
}
 0x1d6   :  { %s385_s15 = scalar_lea.hbm %s523_s5, 256 }
 0x1d7   :  { %p386_p5 = scmp.ne.s32.totalorder %s523_s5, %s385_s15  ;;  %p389_p6 = scmp.lt.u32.totalorder %s385_s15, %s523_s5 }
 0x1d9   :  { %p391_p7 = pnand %p389_p6, %p386_p5 }
 0x1db   :  { %394 = shalt.err (!%p391_p7)
}
 0x1dc   :  { %s398_s19 = smov 128   ;;  %s399_s20 = smov 8  }
 0x1dd   :  { %247 = dma.vmem_to_hbm [thread:$0]  %s242_s12, 256, %s523_s5, [#allocation3], %s398_s19, %s398_s19, %s399_s20  }
 0x1de   :  { %395 = dma.done.wait [#allocation3], 256  }
 0x1df   :  { %396 = vsyncadd [#allocation3], 4294967040 }
 0x1e0   :  { %251 = vsyncpa [#allocation3], 1 }

</bundles_post_ra>
